<compile_context>
chip_gen: v5e
topology: v5e:2x2
jax: 0.10.0
libtpu: 0.0.40
codegen_flags: <defaults>
</compile_context>

<pallas_src>
import functools
import math

import numpy as np
import jax
import jax.numpy as jnp
from jax import lax
from jax.experimental import pallas as pl
from jax.experimental.pallas import tpu as pltpu


def _round_up(x, m):
    return (x + m - 1) // m * m


# ----------------------------------------------------------------------------
# Kernel: per-row smoothed-label KL loss, accumulated per core over row tiles.
# ----------------------------------------------------------------------------
def _smooth_ce_kernel(feat_ref, lab_ref, out_ref, *, eps):
    """Accumulate per-core [loss-sum (lane 0), valid-count (lanes 1..)] into an
    (8, 128) VMEM output block that stays resident across the reduction axis."""
    i = pl.program_id(1)  # reduction ("arbitrary") axis

    @pl.when(i == 0)
    def _():
        out_ref[...] = jnp.zeros_like(out_ref)

    x = feat_ref[...].astype(jnp.float32)          # [TM, C]  (feature.float())
    lab = lab_ref[...]                             # [TM, 1] int32; -1 => ignore/pad
    tm, c = x.shape

    on_v = 1.0 - eps
    off_v = eps / (c - 1)
    # H(q) = sum_j q_j log q_j  (compile-time constant; no per-element log needed)
    h_q = on_v * math.log(on_v) + eps * math.log(off_v)

    # One-hot membership built in-kernel from integer labels (no HBM one-hot).
    classes = lax.broadcasted_iota(jnp.int32, (tm, c), 1)
    onehot = classes == lab                        # broadcast [TM,1] -> [TM,C]

    # log_softmax pieces: 1 exp per element, 1 log per row.
    m = jnp.max(x, axis=1, keepdims=True)
    z = x - m
    lse = jnp.log(jnp.sum(jnp.exp(z), axis=1, keepdims=True))        # [TM,1]
    sum_z = jnp.sum(z, axis=1, keepdims=True)                        # [TM,1]
    sel_z = jnp.sum(jnp.where(onehot, z, 0.0), axis=1, keepdims=True)  # z at target

    # row_loss = sum_j q_j (log q_j - log p_j) = H(q) + lse - sum_j q_j z_j
    qz = off_v * sum_z + (on_v - off_v) * sel_z
    row_loss = h_q + lse - qz                                        # [TM, 1]

    # jnp.where (not multiply) so garbage feature rows in ragged/duplicated tiles
    # cannot poison the sum with NaN/Inf.
    valid = lab >= 0
    s = jnp.sum(jnp.where(valid, row_loss, 0.0))   # masked loss sum (scalar)
    v = jnp.sum(jnp.where(valid, 1.0, 0.0))        # valid-row count (scalar)

    # Accumulate: lane 0 carries the loss sum, lanes 1..127 the count.
    lanes = lax.broadcasted_iota(jnp.int32, out_ref.shape, 1)
    out_ref[...] += jnp.where(lanes == 0, s, v)


# ----------------------------------------------------------------------------
# Wrapper
# ----------------------------------------------------------------------------
def smooth_label_cross_entropy(feature, target, *, eps=0.1, ignore_index=None,
                               max_block_rows=None, vmem_budget_bytes=8 << 20):
    """JAX/Pallas equivalent of SmoothLabelCrossEntropyLoss(eps, ignore_index).

    feature: [N, C] float (f32 or bf16) logits.   target: [N] integer class ids.
    The full class axis stays in one tile (it is the softmax axis); for very large
    C a two-pass / online logsumexp tiling over C would be needed.
    """
    feature = jnp.asarray(feature)                 # keep native dtype (bf16 ok)
    target = jnp.asarray(target, dtype=jnp.int32)
    n, c = feature.shape

    # Fold ignore_index (and label padding below) into a single -1 sentinel.
    if ignore_index is not None:
        target = jnp.where(target == jnp.int32(ignore_index), jnp.int32(-1), target)

    # --- row-tile size from a VMEM byte budget --------------------------------
    # Per row, per pipeline buffer: lane-padded feature row + lane-padded (tm,1)
    # int32 label row (128 * 4 B).  Double-buffered => x2.
    itemsize = jnp.dtype(feature.dtype).itemsize
    feat_row_bytes = _round_up(c, 128) * itemsize
    bytes_per_row = 2 * (feat_row_bytes + 128 * 4)
    tm = max(16, (int(vmem_budget_bytes) // bytes_per_row) // 16 * 16)
    if max_block_rows is not None:
        tm = min(tm, max(16, _round_up(int(max_block_rows), 16)))
    tm = min(tm, n)                                # single full-height block if small

    total_tiles = pl.cdiv(n, tm)
    nc = 2 if total_tiles >= 2 else 1              # megacore split of the row axis
    steps = pl.cdiv(total_tiles, nc)
    last_tile = total_tiles - 1

    # Pad ONLY the labels (tiny) so every label block is in bounds and tail rows
    # carry the ignore sentinel.  The [N, C] feature is never copied or padded.
    n_pad = nc * steps * tm
    labels = jnp.pad(target, (0, n_pad - n), constant_values=-1).reshape(n_pad, 1)

    def feat_map(cidx, i):
        # Clamp so no feature block is fully out of bounds; duplicated rows read
        # this way are masked off by their (-1 padded) label rows.
        return (jnp.minimum(cidx * steps + i, last_tile), 0)

    def lab_map(cidx, i):
        return (cidx * steps + i, 0)

    acc = pl.pallas_call(
        functools.partial(_smooth_ce_kernel, eps=float(eps)),
        out_shape=jax.ShapeDtypeStruct((nc * 8, 128), jnp.float32),
        grid=(nc, steps),
        in_specs=[pl.BlockSpec((tm, c), feat_map),
                  pl.BlockSpec((tm, 1), lab_map)],
        out_specs=pl.BlockSpec((8, 128), lambda cidx, i: (cidx, 0)),
        compiler_params=pltpu.CompilerParams(
            dimension_semantics=("parallel", "arbitrary"),
            vmem_limit_bytes=32 * 1024 * 1024),
        cost_estimate=pl.CostEstimate(
            flops=6 * n * c,
            transcendentals=n * c + n,
            bytes_accessed=n * c * itemsize + n_pad * 4 + nc * 8 * 128 * 4),
    )(feature, labels)

    # Reduce the per-core partials outside the kernel.
    acc = acc.reshape(nc, 8, 128)
    loss_sum = jnp.sum(acc[:, 0, 0])
    n_valid = jnp.sum(acc[:, 0, 1])
    # TODO(synk): if every row is ignored this is 0/0 (torch asserts instead).
    return loss_sum / n_valid


# ----------------------------------------------------------------------------
# Pure-JAX reference (mirrors the torch forward literally)
# ----------------------------------------------------------------------------
def reference_loss(feature, target, eps=0.1, ignore_index=None):
    feature = jnp.asarray(feature, jnp.float32)
    target_np = np.asarray(target)
    if ignore_index is not None:
        keep = target_np != ignore_index
        feature = feature[np.asarray(keep)]
        target_np = target_np[keep]
    assert target_np.size > 0
    n_class = feature.shape[1]
    one_hot = jax.nn.one_hot(jnp.asarray(target_np), n_class, dtype=jnp.float32)
    one_hot = one_hot * (1.0 - eps) + (1.0 - one_hot) * eps / (n_class - 1)
    log_prb = jax.nn.log_softmax(feature, axis=1)
    loss = one_hot * (jnp.log(one_hot) - log_prb)   # KLDivLoss(reduction='none')
    return loss.sum(axis=1).mean()


# ----------------------------------------------------------------------------
if __name__ == "__main__":
    key = jax.random.PRNGKey(0)
    n, n_class = 48, 32            # e.g. batch=6 * seq=8 flattened rows, 32 classes
    k1, k2 = jax.random.split(key)
    feature = jax.random.normal(k1, (n, n_class), dtype=jnp.float32)
    target = jax.random.randint(k2, (n,), 0, n_class, dtype=jnp.int32)

    # Case 1: f32 logits, default budget-sized tile (single tile, grid (1,1)).
    loss = smooth_label_cross_entropy(feature, target, eps=0.1)
    loss = jax.block_until_ready(loss)
    ref = reference_loss(feature, target, eps=0.1)
    np.testing.assert_allclose(np.asarray(loss), np.asarray(ref), rtol=1e-5, atol=1e-6)

    # Case 2: bf16 logits + ignore_index + forced 16-row tiles -> 3 row tiles split
    # across the 2-way "parallel" axis (exercises the clamped duplicate tile, label
    # padding/masking, per-core partial reduction).
    ignore_index = -100
    target_ig = target.at[jnp.array([3, 17, 40])].set(ignore_index)
    feature_bf16 = feature.astype(jnp.bfloat16)
    loss_ig = smooth_label_cross_entropy(feature_bf16, target_ig, eps=0.1,
                                         ignore_index=ignore_index, max_block_rows=16)
    loss_ig = jax.block_until_ready(loss_ig)
    ref_ig = reference_loss(feature_bf16, target_ig, eps=0.1,
                            ignore_index=ignore_index)
    np.testing.assert_allclose(np.asarray(loss_ig), np.asarray(ref_ig),
                               rtol=1e-5, atol=1e-6)

    print("KERNEL_OK")
</pallas_src>

<mosaic_0001>
module attributes {stable_mosaic.version = 11 : i64} {
  func.func @_smooth_ce_kernel(%arg0: i32, %arg1: i32, %arg2: memref<48x32xf32, #tpu.memory_space<vmem>>, %arg3: memref<48x1xi32, #tpu.memory_space<vmem>>, %arg4: memref<8x128xf32, #tpu.memory_space<vmem>>) attributes {dimension_semantics = [#tpu.dimension_semantics<parallel>, #tpu.dimension_semantics<arbitrary>], iteration_bounds = array<i64: 1, 1>, scalar_prefetch = 0 : i64, scratch_operands = 0 : i64, tpu.core_type = #tpu.core_type<tc>, window_params = [{transform_indices = @transform_0, window_bounds = array<i64: 48, 32>}, {transform_indices = @transform_1, window_bounds = array<i64: 48, 1>}, {transform_indices = @transform_2, window_bounds = array<i64: 8, 128>}]} {
    %c0_i32 = arith.constant 0 : i32
    %0 = arith.cmpi eq, %arg1, %c0_i32 : i32
    %1 = arith.extui %0 : i1 to i32
    %c0_i32_0 = arith.constant 0 : i32
    %2 = arith.cmpi ne, %1, %c0_i32_0 : i32
    scf.if %2 {
      %cst_22 = arith.constant 0.000000e+00 : f32
      %54 = vector.broadcast %cst_22 : f32 to vector<8x128xf32>
      %c0_23 = arith.constant 0 : index
      %c0_24 = arith.constant 0 : index
      %55 = vector.load %arg4[%c0_23, %c0_24] : memref<8x128xf32, #tpu.memory_space<vmem>>, vector<8x128xf32>
      tpu.vector_store %arg4[%c0_23, %c0_24], %54 {strides = array<i32>} : memref<8x128xf32, #tpu.memory_space<vmem>>, vector<8x128xf32>,
    } else {
    }
    %c0 = arith.constant 0 : index
    %c0_1 = arith.constant 0 : index
    %3 = vector.load %arg2[%c0, %c0_1] : memref<48x32xf32, #tpu.memory_space<vmem>>, vector<48x32xf32>
    %c0_2 = arith.constant 0 : index
    %c0_3 = arith.constant 0 : index
    %4 = vector.load %arg3[%c0_2, %c0_3] : memref<48x1xi32, #tpu.memory_space<vmem>>, vector<48x1xi32>
    %5 = tpu.iota {dimensions = array<i32: 1>} : vector<48x32xi32>
    %6 = vector.broadcast %4 : vector<48x1xi32> to vector<48x32xi32>
    %7 = arith.cmpi eq, %5, %6 : vector<48x32xi32>
    %cst = arith.constant dense<0xFF800000> : vector<48xf32>
    %8 = vector.multi_reduction <maximumf>, %3, %cst [1] : vector<48x32xf32> to vector<48xf32>
    %9 = vector.shape_cast %8 : vector<48xf32> to vector<48x1xf32>
    %10 = vector.broadcast %9 : vector<48x1xf32> to vector<48x32xf32>
    %11 = arith.subf %3, %10 : vector<48x32xf32>
    %12 = math.exp %11 : vector<48x32xf32>
    %cst_4 = arith.constant dense<0.000000e+00> : vector<48xf32>
    %13 = vector.multi_reduction <add>, %12, %cst_4 [1] : vector<48x32xf32> to vector<48xf32>
    %14 = vector.shape_cast %13 : vector<48xf32> to vector<48x1xf32>
    %15 = math.log %14 : vector<48x1xf32>
    %cst_5 = arith.constant dense<0.000000e+00> : vector<48xf32>
    %16 = vector.multi_reduction <add>, %11, %cst_5 [1] : vector<48x32xf32> to vector<48xf32>
    %17 = vector.shape_cast %16 : vector<48xf32> to vector<48x1xf32>
    %cst_6 = arith.constant 0.000000e+00 : f32
    %18 = vector.broadcast %cst_6 : f32 to vector<48x32xf32>
    %19 = arith.select %7, %11, %18 : vector<48x32xi1>, vector<48x32xf32>
    %cst_7 = arith.constant dense<0.000000e+00> : vector<48xf32>
    %20 = vector.multi_reduction <add>, %19, %cst_7 [1] : vector<48x32xf32> to vector<48xf32>
    %21 = vector.shape_cast %20 : vector<48xf32> to vector<48x1xf32>
    %cst_8 = arith.constant 0.0032258064 : f32
    %22 = vector.broadcast %cst_8 : f32 to vector<48x1xf32>
    %23 = arith.mulf %22, %17 : vector<48x1xf32>
    %cst_9 = arith.constant 0.896774172 : f32
    %24 = vector.broadcast %cst_9 : f32 to vector<48x1xf32>
    %25 = arith.mulf %24, %21 : vector<48x1xf32>
    %26 = arith.addf %23, %25 : vector<48x1xf32>
    %cst_10 = arith.constant -0.668481708 : f32
    %27 = vector.broadcast %cst_10 : f32 to vector<48x1xf32>
    %28 = arith.addf %27, %15 : vector<48x1xf32>
    %29 = arith.subf %28, %26 : vector<48x1xf32>
    %c0_i32_11 = arith.constant 0 : i32
    %30 = vector.broadcast %c0_i32_11 : i32 to vector<48x1xi32>
    %31 = arith.cmpi sge, %4, %30 : vector<48x1xi32>
    %cst_12 = arith.constant 0.000000e+00 : f32
    %32 = vector.broadcast %cst_12 : f32 to vector<48x1xf32>
    %33 = arith.select %31, %29, %32 : vector<48x1xi1>, vector<48x1xf32>
    %34 = vector.shape_cast %33 : vector<48x1xf32> to vector<1x48x1xf32>
    %cst_13 = arith.constant dense<0.000000e+00> : vector<1xf32>
    %35 = vector.multi_reduction <add>, %34, %cst_13 [1, 2] : vector<1x48x1xf32> to vector<1xf32>
    %36 = vector.shape_cast %35 : vector<1xf32> to vector<1x1x1xf32>
    %37 = vector.extract %36[0, 0, 0] : f32 from vector<1x1x1xf32>
    %cst_14 = arith.constant 1.000000e+00 : f32
    %cst_15 = arith.constant 0.000000e+00 : f32
    %38 = vector.broadcast %cst_14 : f32 to vector<48x1xf32>
    %39 = vector.broadcast %cst_15 : f32 to vector<48x1xf32>
    %40 = arith.select %31, %38, %39 : vector<48x1xi1>, vector<48x1xf32>
    %41 = vector.shape_cast %40 : vector<48x1xf32> to vector<1x48x1xf32>
    %cst_16 = arith.constant dense<0.000000e+00> : vector<1xf32>
    %42 = vector.multi_reduction <add>, %41, %cst_16 [1, 2] : vector<1x48x1xf32> to vector<1xf32>
    %43 = vector.shape_cast %42 : vector<1xf32> to vector<1x1x1xf32>
    %44 = vector.extract %43[0, 0, 0] : f32 from vector<1x1x1xf32>
    %45 = tpu.iota {dimensions = array<i32: 1>} : vector<8x128xi32>
    %c0_17 = arith.constant 0 : index
    %c0_18 = arith.constant 0 : index
    %46 = vector.load %arg4[%c0_17, %c0_18] : memref<8x128xf32, #tpu.memory_space<vmem>>, vector<8x128xf32>
    %c0_i32_19 = arith.constant 0 : i32
    %47 = vector.broadcast %c0_i32_19 : i32 to vector<8x128xi32>
    %48 = arith.cmpi eq, %45, %47 : vector<8x128xi32>
    %49 = vector.broadcast %37 : f32 to vector<8x128xf32>
    %50 = vector.broadcast %44 : f32 to vector<8x128xf32>
    %51 = arith.select %48, %49, %50 : vector<8x128xi1>, vector<8x128xf32>
    %52 = arith.addf %46, %51 : vector<8x128xf32>
    %c0_20 = arith.constant 0 : index
    %c0_21 = arith.constant 0 : index
    %53 = vector.load %arg4[%c0_20, %c0_21] : memref<8x128xf32, #tpu.memory_space<vmem>>, vector<8x128xf32>
    tpu.vector_store %arg4[%c0_20, %c0_21], %52 {strides = array<i32>} : memref<8x128xf32, #tpu.memory_space<vmem>>, vector<8x128xf32>,
    return
  }
  func.func @transform_0(%arg0: i32, %arg1: i32) -> (i32, i32) {
    %c1_i32 = arith.constant 1 : i32
    %0 = arith.muli %arg0, %c1_i32 : i32
    %1 = arith.addi %0, %arg1 : i32
    %c0_i32 = arith.constant 0 : i32
    %2 = arith.minsi %1, %c0_i32 : i32
    %c0_i32_0 = arith.constant 0 : i32
    %c0_i32_1 = arith.constant 0 : i32
    return %2, %c0_i32_0 : i32, i32
  }
  func.func @transform_1(%arg0: i32, %arg1: i32) -> (i32, i32) {
    %c1_i32 = arith.constant 1 : i32
    %0 = arith.muli %arg0, %c1_i32 : i32
    %1 = arith.addi %0, %arg1 : i32
    %c0_i32 = arith.constant 0 : i32
    %c0_i32_0 = arith.constant 0 : i32
    return %1, %c0_i32 : i32, i32
  }
  func.func @transform_2(%arg0: i32, %arg1: i32) -> (i32, i32) {
    %c0_i32 = arith.constant 0 : i32
    %c0_i32_0 = arith.constant 0 : i32
    return %arg0, %c0_i32 : i32, i32
  }
}

</mosaic_0001>

<bundles_post_ra>
// kernel: tpu_custom_call.1
= control target key start
LH: loop header
LB: loop body
LE: loop exit
PB: predicated region body
PF: predicated region fallthrough
CT: control target
= control target key end

     0   :  { %vm109_vm0 = vcmask 261120   ;;  %v402_v6 = vmov 0   ;;  %s565_s0 = inlined_call_operand.vmem [shape: f32[48,32], index: 0, kind: input, shape index: {}]   ;;  %s566_s1 = inlined_call_operand.vmem [shape: s32[48,1], index: 1, kind: input, shape index: {}]   ;;  %s567_s2 = inlined_call_operand.hbm [shape: f32[8,128], index: 2, kind: output, shape index: {}]  }
   0x1   :  { %v423_v0 = vld [vmem:[%s565_s0 + $0x20] sm:$0xff]  ;;  %v73_v1 = vld [vmem:[%s565_s0 + $0x10] sm:$0xff]  ;;  %349 = vset.pattern.permute.xlu0 %v402_v6  ;;  %350 = vset.pattern.permute.xlu1 %v402_v6  ;;  %v443_v8 = vld [vmem:[%s566_s1 + $0x8] sm:$0xff] }
   0x2   :  { %v71_v2 = vld [vmem:[%s565_s0] sm:$0xff]  ;;  %v122_v3 = vsel %vm109_vm0, %v423_v0, -inf  ;;  %v116_v4 = vsel %vm109_vm0, %v73_v1, -inf  ;;  %vm249_vm2 = vcmp.ge.s32.totalorder %v443_v8, 0  ;;  %351 = vset.pattern.permute.xlu2 %v402_v6  ;;  %v450_v9 = vld [vmem:[%s566_s1 + $0x10] sm:$0xff] }
   0x3   :  { %v110_v5 = vsel %vm109_vm0, %v71_v2, -inf  ;;  %123 = vmax.xlane.f32.xlu2 %v122_v3  ;;  %117 = vmax.xlane.f32.xlu1 %v116_v4  ;;  %v438_v7 = vld [vmem:[%s566_s1] sm:$0xff] }
   0x4   :  { %111 = vmax.xlane.f32.xlu0 %v110_v5  ;;  %vm248_vm1 = vcmp.ge.s32.totalorder %v438_v7, 0 }
   0x5   :  { %7 = vsyncpa [#allocation3], 0  ;;  %v76_v10 = vld [vmem:[%s565_s0 + $0x28] sm:$0xff]  ;;  %v74_v11 = vld [vmem:[%s565_s0 + $0x18] sm:$0xff]  ;;  %vm260_vm3 = vcmask 7168   ;;  %v403_v12 = vmov 0.0   ;;  %v83_v43 = vlaneseq }
   0x6   :  { %v281_v13 = vsel %vm248_vm1, 1.0, %v403_v12  ;;  %v282_v14 = vsel %vm249_vm2, 1.0, %v403_v12  ;;  %vm250_vm4 = vcmp.ge.s32.totalorder %v450_v9, 0  ;;  %v72_v15 = vld [vmem:[%s565_s0 + $0x8] sm:$0xff]  ;;  %v125_v21 = vsel %vm109_vm0, %v76_v10, -inf  ;;  %v485_v25 = vld [vmem:[%s566_s1 + $0x18] sm:$0xff] }
   0x7   :  { %v287_v16 = vsel %vm260_vm3, %v281_v13, 0.0  ;;  %v288_v17 = vsel %vm260_vm3, %v282_v14, 0.0  ;;  %v283_v18 = vsel %vm250_vm4, 1.0, %v403_v12  ;;  %v119_v22 = vsel %vm109_vm0, %v74_v11, -inf  ;;  %v490_v26 = vld [vmem:[%s566_s1 + $0x20] sm:$0xff]  ;;  %v497_v27 = vld [vmem:[%s566_s1 + $0x28] sm:$0xff] }
   0x8   :  { %v289_v19 = vadd.f32 %v288_v17, %v287_v16  ;;  %v290_v20 = vsel %vm260_vm3, %v283_v18, 0.0  ;;  %v113_v23 = vsel %vm109_vm0, %v72_v15, -inf  ;;  %v504_v48 = vand.u32 127, %v83_v43  ;;  %s404_s4 = smov [#allocation2]   ;;  %s321_s9 = sshll.u32 %s567_s2, 4  ;;  %s322_s9 = int_to_ptr.hbm [resolvable:$true] %s321_s9 }
   0x9   :  { %vm251_vm11 = vcmp.ge.s32.totalorder %v485_v25, 0  ;;  %vm252_vm12 = vcmp.ge.s32.totalorder %v490_v26, 0  ;;  %vm253_vm13 = vcmp.ge.s32.totalorder %v497_v27, 0  ;;  %s319_s5 = sshll.u32 %s404_s4, 4  ;;  %s320_s5 = int_to_ptr.vmem [resolvable:$true] %s319_s5 }
   0xa   :  { %v477_v24 = vadd.f32 %v290_v20, %v289_v19  ;;  %vm308_vm14 = vcmp.eq.s32.totalorder %v504_v48, 0 }
   0xb   :  { %126 = vmax.xlane.f32.xlu2 %v125_v21  ;;  %120 = vmax.xlane.f32.xlu1 %v119_v22 }
   0xc   :  { %114 = vmax.xlane.f32.xlu0 %v113_v23 }
  0x20   :  { %86 = vperm.xlu0 %349, %v438_v7  }
  0x23   :  { %92 = vperm.xlu2 %351, %v450_v9  }
  0x24   :  { %89 = vperm.xlu1 %350, %v443_v8  }
  0x2b   :  { %95 = vperm.xlu2 %351, %v485_v25  }
  0x2c   :  { %98 = vperm.xlu1 %350, %v490_v26  }
  0x33   :  { %101 = vperm.xlu2 %351, %v497_v27  }
  0x76   :  { %v118_v28 = vpop.xlane.xlu1 %117  ;;  %v124_v38 = vpop.xlane.xlu2 %123 }
  0x77   :  { %v130_v29 = vsub.f32 %v73_v1, %v118_v28  ;;  %v112_v30 = vpop.xlane.xlu0 %111  ;;  %v132_v52 = vsub.f32 %v423_v0, %v124_v38 }
  0x78   :  { %v128_v31 = vsub.f32 %v71_v2, %v112_v30 }
  0x79   :  { %v182_v32 = vsel %vm109_vm0, %v130_v29, 0.0  ;;  %v138_v47 = vmul.f32 1.442695, %v130_v29  ;;  %v142_v57 = vmul.f32 1.442695, %v132_v52  ;;  %v188_v20 = vsel %vm109_vm0, %v132_v52, 0.0 }
  0x7a   :  { %183 = vadd.xlane.f32.xlu2 %v182_v32  ;;  %v176_v33 = vsel %vm109_vm0, %v128_v31, 0.0  ;;  %v134_v39 = vmul.f32 1.442695, %v128_v31 }
  0x7b   :  { %177 = vadd.xlane.f32.xlu0 %v176_v33  ;;  %v284_v33 = vsel %vm251_vm11, 1.0, %v403_v12 }
  0x7c   :  { %352 = vpow2.f32 %v134_v39 }
  0x7e   :  { %v121_v37 = vpop.xlane.xlu1 %120  ;;  %v127_v44 = vpop.xlane.xlu2 %126 }
  0x7f   :  { %v115_v34 = vpop.xlane.xlu0 %114  ;;  %v131_v40 = vsub.f32 %v74_v11, %v121_v37  ;;  %v133_v46 = vsub.f32 %v76_v10, %v127_v44 }
  0x80   :  { %v129_v35 = vsub.f32 %v72_v15, %v115_v34 }
  0x81   :  { %v185_v41 = vsel %vm109_vm0, %v131_v40, 0.0  ;;  %v140_v42 = vmul.f32 1.442695, %v131_v40  ;;  %v144_v51 = vmul.f32 1.442695, %v133_v46  ;;  %v191_v21 = vsel %vm109_vm0, %v133_v46, 0.0 }
  0x82   :  { %v179_v36 = vsel %vm109_vm0, %v129_v35, 0.0  ;;  %v353_v45 = vpop.eup %352  ;;  %v136_v63 = vmul.f32 1.442695, %v129_v35 }
  0x83   :  { %180 = vadd.xlane.f32.xlu1 %v179_v36  ;;  %354 = vpow2.f32 %v140_v42  ;;  %v146_v50 = vsel %vm109_vm0, %v353_v45, 0.0  ;;  %v285_v36 = vsel %vm252_vm12, 1.0, %v403_v12 }
  0x84   :  { %356 = vpow2.f32 %v138_v47  ;;  %v294_v39 = vsel %vm260_vm3, %v285_v36, 0.0 }
  0x85   :  { %358 = vpow2.f32 %v144_v51 }
  0x86   :  { %v93_v58 = vpop.permute.xlu2 %92  ;;  %360 = vpow2.f32 %v142_v57 }
  0x87   :  { %vm105_vm7 = vcmp.eq.s32.totalorder %v504_v48, %v93_v58  ;;  %362 = vpow2.f32 %v136_v63 }
  0x88   :  { %v196_v2 = vsel %vm105_vm7, %v130_v29, 0.0 }
  0x89   :  { %v355_v56 = vpop.eup %354  ;;  %v206_v5 = vsel %vm109_vm0, %v196_v2, 0.0 }
  0x8a   :  { %v357_v61 = vpop.eup %356  ;;  %v155_v62 = vsel %vm109_vm0, %v355_v56, 0.0 }
  0x8b   :  { %186 = vadd.xlane.f32.xlu1 %v185_v41  ;;  %v359_v0 = vpop.eup %358  ;;  %v152_v1 = vsel %vm109_vm0, %v357_v61, 0.0  ;;  %v286_v41 = vsel %vm253_vm13, 1.0, %v403_v12 }
  0x8c   :  { %v161_v3 = vsel %vm109_vm0, %v359_v0, 0.0  ;;  %v361_v6 = vpop.eup %360  ;;  %v296_v43 = vsel %vm260_vm3, %v286_v41, 0.0 }
  0x8d   :  { %v158_v11 = vsel %vm109_vm0, %v361_v6, 0.0  ;;  %v363_v13 = vpop.eup %362 }
  0x8e   :  { %v96_v10 = vpop.permute.xlu2 %95  ;;  %v149_v15 = vsel %vm109_vm0, %v363_v13, 0.0 }
  0x8f   :  { %vm106_vm9 = vcmp.eq.s32.totalorder %v504_v48, %v96_v10 }
  0x90   :  { %v197_v17 = vsel %vm106_vm9, %v131_v40, 0.0 }
  0x91   :  { %v209_v18 = vsel %vm109_vm0, %v197_v17, 0.0 }
  0x92   :  { %v87_v49 = vpop.permute.xlu0 %86 }
  0x93   :  { %vm103_vm5 = vcmp.eq.s32.totalorder %v504_v48, %v87_v49  ;;  %147 = vadd.xlane.f32.xlu1 %v146_v50 }
  0x94   :  { %v194_v53 = vsel %vm103_vm5, %v128_v31, 0.0 }
  0x95   :  { %v200_v54 = vsel %vm109_vm0, %v194_v53, 0.0 }
  0x96   :  { %201 = vadd.xlane.f32.xlu2 %v200_v54  ;;  %v90_v55 = vpop.permute.xlu1 %89  ;;  %v102_v19 = vpop.permute.xlu2 %101 }
  0x97   :  { %vm104_vm6 = vcmp.eq.s32.totalorder %v504_v48, %v90_v55  ;;  %vm108_vm10 = vcmp.eq.s32.totalorder %v504_v48, %v102_v19 }
  0x98   :  { %v195_v59 = vsel %vm104_vm6, %v129_v35, 0.0  ;;  %v199_v22 = vsel %vm108_vm10, %v133_v46, 0.0  ;;  %v292_v35 = vsel %vm260_vm3, %v284_v33, 0.0 }
  0x99   :  { %v203_v60 = vsel %vm109_vm0, %v195_v59, 0.0  ;;  %v215_v23 = vsel %vm109_vm0, %v199_v22, 0.0  ;;  %v293_v38 = vadd.f32 %v292_v35, %v477_v24 }
  0x9a   :  { %204 = vadd.xlane.f32.xlu0 %v203_v60 }
  0x9b   :  { %156 = vadd.xlane.f32.xlu1 %v155_v62  ;;  %v295_v42 = vadd.f32 %v294_v39, %v293_v38 }
  0x9d   :  { %v297_v45 = vadd.f32 %v296_v43, %v295_v42 }
  0x9e   :  { %153 = vadd.xlane.f32.xlu2 %v152_v1  ;;  %v99_v4 = vpop.permute.xlu1 %98 }
  0x9f   :  { %vm107_vm8 = vcmp.eq.s32.totalorder %v504_v48, %v99_v4 }
  0xa0   :  { %v198_v14 = vsel %vm107_vm8, %v132_v52, 0.0 }
  0xa1   :  { %v212_v16 = vsel %vm109_vm0, %v198_v14, 0.0 }
  0xa2   :  { %207 = vadd.xlane.f32.xlu0 %v206_v5 }
  0xa3   :  { %162 = vadd.xlane.f32.xlu1 %v161_v3 }
  0xa6   :  { %159 = vadd.xlane.f32.xlu2 %v158_v11 }
  0xaa   :  { %150 = vadd.xlane.f32.xlu0 %v149_v15 }
  0xab   :  { %213 = vadd.xlane.f32.xlu1 %v212_v16 }
  0xae   :  { %210 = vadd.xlane.f32.xlu2 %v209_v18 }
  0xb2   :  { %189 = vadd.xlane.f32.xlu0 %v188_v20 }
  0xb6   :  { %192 = vadd.xlane.f32.xlu2 %v191_v21 }
  0xba   :  { %216 = vadd.xlane.f32.xlu0 %v215_v23 }
  0xbe   :  { %298 = vadd.xlane.f32.xlu2 %v297_v45 }
  0xed   :  { %v184_v30 = vpop.xlane.xlu2 %183 }
  0xee   :  { %v178_v31 = vpop.xlane.xlu0 %177  ;;  %v220_v60 = vmul.f32 0.0032258064, %v184_v30 }
  0xef   :  { %v218_v55 = vmul.f32 0.0032258064, %v178_v31 }
  0xf6   :  { %v181_v28 = vpop.xlane.xlu1 %180 }
  0xf7   :  { %v219_v5 = vmul.f32 0.0032258064, %v181_v28 }
  0xfe   :  { %v187_v29 = vpop.xlane.xlu1 %186 }
  0xff   :  { %v221_v61 = vmul.f32 0.0032258064, %v187_v29 }
 0x106   :  { %v148_v32 = vpop.xlane.xlu1 %147 }
 0x107   :  { %364 = vlog2.f32 %v148_v32 }
 0x109   :  { %v202_v34 = vpop.xlane.xlu2 %201 }
 0x10a   :  { %v224_v53 = vmul.f32 0.8967742, %v202_v34 }
 0x10c   :  { %v230_v62 = vadd.f32 %v224_v53, %v218_v55 }
 0x10d   :  { %v205_v37 = vpop.xlane.xlu0 %204  ;;  %v365_v47 = vpop.eup %364 }
 0x10e   :  { %v157_v40 = vpop.xlane.xlu1 %156  ;;  %v165_v51 = vmul.f32 0.6931472, %v365_v47  ;;  %v225_v1 = vmul.f32 0.8967742, %v205_v37 }
 0x110   :  { %v236_v56 = vadd.f32 -0.6684817, %v165_v51  ;;  %v231_v19 = vadd.f32 %v225_v1, %v219_v5 }
 0x111   :  { %v154_v44 = vpop.xlane.xlu2 %153 }
 0x112   :  { %366 = vlog2.f32 %v154_v44  ;;  %v242_v6 = vsub.f32 %v236_v56, %v230_v62 }
 0x113   :  { %368 = vlog2.f32 %v157_v40 }
 0x114   :  { %v254_v29 = vsel %vm248_vm1, %v242_v6, 0.0 }
 0x115   :  { %v208_v46 = vpop.xlane.xlu0 %207  ;;  %v261_v36 = vsel %vm260_vm3, %v254_v29, 0.0 }
 0x116   :  { %v163_v49 = vpop.xlane.xlu1 %162  ;;  %v226_v57 = vmul.f32 0.8967742, %v208_v46 }
 0x118   :  { %v367_v24 = vpop.eup %366  ;;  %v232_v10 = vadd.f32 %v226_v57, %v220_v60 }
 0x119   :  { %v160_v50 = vpop.xlane.xlu2 %159  ;;  %v169_v12 = vmul.f32 0.6931472, %v367_v24  ;;  %v369_v54 = vpop.eup %368 }
 0x11a   :  { %370 = vlog2.f32 %v160_v50  ;;  %v171_v0 = vmul.f32 0.6931472, %v369_v54 }
 0x11b   :  { %v238_v2 = vadd.f32 -0.6684817, %v169_v12 }
 0x11c   :  { %v239_v18 = vadd.f32 -0.6684817, %v171_v0 }
 0x11d   :  { %v151_v52 = vpop.xlane.xlu0 %150  ;;  %v244_v20 = vsub.f32 %v238_v2, %v232_v10 }
 0x11e   :  { %372 = vlog2.f32 %v151_v52  ;;  %v214_v3 = vpop.xlane.xlu1 %213 }
 0x11f   :  { %374 = vlog2.f32 %v163_v49  ;;  %v228_v16 = vmul.f32 0.8967742, %v214_v3  ;;  %v256_v32 = vsel %vm250_vm4, %v244_v20, 0.0 }
 0x120   :  { %v371_v59 = vpop.eup %370  ;;  %v264_v41 = vsel %vm260_vm3, %v256_v32, 0.0 }
 0x121   :  { %v211_v58 = vpop.xlane.xlu2 %210  ;;  %v173_v11 = vmul.f32 0.6931472, %v371_v59 }
 0x122   :  { %v227_v63 = vmul.f32 0.8967742, %v211_v58 }
 0x123   :  { %v240_v30 = vadd.f32 -0.6684817, %v173_v11 }
 0x124   :  { %v373_v4 = vpop.eup %372  ;;  %v233_v14 = vadd.f32 %v227_v63, %v221_v61 }
 0x125   :  { %v167_v13 = vmul.f32 0.6931472, %v373_v4  ;;  %v190_v15 = vpop.xlane.xlu0 %189  ;;  %v375_v23 = vpop.eup %374 }
 0x126   :  { %v222_v17 = vmul.f32 0.0032258064, %v190_v15  ;;  %v245_v28 = vsub.f32 %v239_v18, %v233_v14  ;;  %v175_v37 = vmul.f32 0.6931472, %v375_v23 }
 0x127   :  { %v237_v21 = vadd.f32 -0.6684817, %v167_v13 }
 0x128   :  { %v234_v22 = vadd.f32 %v228_v16, %v222_v17  ;;  %v257_v7 = vsel %vm251_vm11, %v245_v28, 0.0  ;;  %v241_v44 = vadd.f32 -0.6684817, %v175_v37 }
 0x129   :  { %v243_v31 = vsub.f32 %v237_v21, %v231_v19  ;;  %v193_v35 = vpop.xlane.xlu2 %192  ;;  %v266_v46 = vsel %vm260_vm3, %v257_v7, 0.0 }
 0x12a   :  { %v246_v34 = vsub.f32 %v240_v30, %v234_v22  ;;  %v223_v42 = vmul.f32 0.0032258064, %v193_v35 }
 0x12b   :  { %v255_v33 = vsel %vm249_vm2, %v243_v31, 0.0 }
 0x12c   :  { %v262_v38 = vsel %vm260_vm3, %v255_v33, 0.0  ;;  %v258_v8 = vsel %vm252_vm12, %v246_v34, 0.0 }
 0x12d   :  { %v263_v39 = vadd.f32 %v262_v38, %v261_v36  ;;  %v217_v40 = vpop.xlane.xlu0 %216  ;;  %v268_v50 = vsel %vm260_vm3, %v258_v8, 0.0 }
 0x12e   :  { %v229_v9 = vmul.f32 0.8967742, %v217_v40 }
 0x12f   :  { %v265_v43 = vadd.f32 %v264_v41, %v263_v39 }
 0x130   :  { %v235_v45 = vadd.f32 %v229_v9, %v223_v42 }
 0x131   :  { %v267_v47 = vadd.f32 %v266_v46, %v265_v43  ;;  %v299_v53 = vpop.xlane.xlu2 %298 }
 0x132   :  { %v247_v49 = vsub.f32 %v241_v44, %v235_v45  ;;  %v300_v26 = vrot.slane %v299_v53, 4 }
 0x133   :  { %v269_v24 = vadd.f32 %v268_v50, %v267_v47 }
 0x134   :  { %v259_v25 = vsel %vm253_vm13, %v247_v49, 0.0  ;;  %v301_v12 = vadd.f32 %v300_v26, %v299_v53 }
 0x135   :  { %v270_v51 = vsel %vm260_vm3, %v259_v25, 0.0 }
 0x136   :  { %v271_v52 = vadd.f32 %v270_v51, %v269_v24  ;;  %v302_v54 = vrot.slane %v301_v12, 2 }
 0x138   :  { %272 = vadd.xlane.f32.xlu1 %v271_v52  ;;  %v303_v58 = vadd.f32 %v302_v54, %v301_v12 }
 0x13a   :  { %v304_v61 = vrot.slane %v303_v58, 1 }
 0x13c   :  { %v305_v0 = vadd.f32 %v304_v61, %v303_v58 }
 0x1ab   :  { %v273_v55 = vpop.xlane.xlu1 %272 }
 0x1ac   :  { %v274_v56 = vrot.slane %v273_v55, 4 }
 0x1ae   :  { %v275_v57 = vadd.f32 %v274_v56, %v273_v55 }
 0x1b0   :  { %v276_v59 = vrot.slane %v275_v57, 2 }
 0x1b2   :  { %v277_v60 = vadd.f32 %v276_v59, %v275_v57 }
 0x1b4   :  { %v278_v62 = vrot.slane %v277_v60, 1 }
 0x1b6   :  { %v279_v63 = vadd.f32 %v278_v62, %v277_v60 }
 0x1b8   :  { %342 = vpush %v279_v63 }
 0x1b9   :  { %344 = vpush %v305_v0 }
 0x1e9   :  { %s343_s1 = spop %342 }
 0x1ea   :  { %v309_v27 = vstv %s343_s1  ;;  %s345_s6 = spop %344 }
 0x1eb   :  { %v310_v1 = vstv %s345_s6 }
 0x1ec   :  { %v311_v2 = vsel %vm308_vm14, %v309_v27, %v310_v1 }
 0x1ed   :  { %313 = vst [vmem:[#allocation2] sm:$0xff] %v311_v2 }
 0x1ee   :  { %324 = dma.vmem_to_hbm [thread:$0]  %s320_s5, 128, %s322_s9, [#allocation3]  }
 0x1ef   :  { %400 = dma.done.wait [#allocation3], 128  }
 0x1f0   :  { %401 = vsyncadd [#allocation3], 4294967168 }
 0x1f1   :  { %329 = vsyncpa [#allocation3], 1 }

</bundles_post_ra>
